<compile_context>
chip_gen: v6e
topology: v6e:2x2x1
jax: 0.10.0
libtpu: 0.0.40
codegen_flags: <defaults>
</compile_context>

<pallas_src>
import functools

import jax
import jax.numpy as jnp
from jax.experimental import pallas as pl
from jax.experimental.pallas import tpu as pltpu

NEG_SLOPE = 0.01          # nn.LeakyReLU() default
LANE = 128                # TPU lane width
_MAX_TILE_B = 1024        # measured sweet spot is 256-1024 rows


def _round_up(n, m):
    return (n + m - 1) // m * m


def _leaky_relu(v):
    return jnp.where(v > 0, v, NEG_SLOPE * v)


# --------------------------- hardware probes (cached) ------------------------

@functools.lru_cache(maxsize=None)
def _vmem_config():
    """(vmem_limit_bytes, data_budget_bytes) chosen per TPU generation."""
    cap = None
    try:
        cap = int(pltpu.get_tpu_info().vmem_capacity_bytes)
    except Exception:
        cap = None
    if cap is not None and cap >= 100 * 1024 * 1024:
        # v5e / v6e: 128 MiB physical VMEM -> use most of it.
        return 96 * 1024 * 1024, 64 * 1024 * 1024
    # v7x (64 MiB physical) or unknown generation: stay conservative.
    return 48 * 1024 * 1024, 28 * 1024 * 1024


@functools.lru_cache(maxsize=None)
def _num_tensorcores():
    """TensorCores per chip (2 on v7x, 1 on v5e/v6e). Conservative default 1."""
    probes = []
    try:
        probes.append(pltpu.get_tpu_info())
    except Exception:
        pass
    try:
        probes.append(jax.devices()[0])
    except Exception:
        pass
    for obj in probes:
        for attr in ("num_cores", "core_count", "num_tensorcores", "cores_per_chip"):
            v = getattr(obj, attr, None)
            if isinstance(v, int) and v >= 1:
                return v
    return 1


@functools.lru_cache(maxsize=None)
def _single_buffered_weights_supported():
    """Explicit capability + correctness probe for pl.Buffered(1) constant blocks.

    Runs a tiny pallas_call once (constant-index input block over a grid of 2,
    like the resident weights in the real kernel) and checks the result, so the
    real kernel never executes under a broad try/except."""
    if not hasattr(pl, "Buffered"):
        return False
    try:
        def _probe(a_ref, o_ref):
            o_ref[...] = a_ref[...] + 1.0

        fn = pl.pallas_call(
            _probe,
            out_shape=jax.ShapeDtypeStruct((16, LANE), jnp.float32),
            grid=(2,),
            in_specs=[pl.BlockSpec((8, LANE), lambda i: (0, 0),
                                   pipeline_mode=pl.Buffered(1))],
            out_specs=pl.BlockSpec((8, LANE), lambda i: (i, 0)),
        )
        a = jnp.arange(8 * LANE, dtype=jnp.float32).reshape(8, LANE)
        y = jax.block_until_ready(fn(a))
        expect = jnp.concatenate([a + 1.0, a + 1.0], axis=0)
        return bool(jnp.allclose(y, expect))
    except Exception:
        return False


# ----------------------------- one-time param prep ---------------------------

def prepare_params(params, *, compute_dtype=jnp.bfloat16):
    """One-time (model-load) prep: pad weights/biases to lane-dense shapes and
    cast weights to the MXU compute dtype.

    params: dict with w{1..4} of shape (in_features, out_features) and
    b{1..4} of shape (1, out_features) or (out_features,), all f32.
    """
    in_dim, hid = params["w1"].shape
    ncls = params["w4"].shape[1]
    hid_pad = _round_up(hid, LANE)
    out_pad = _round_up(ncls, LANE)

    def padw(w, rows, cols):
        r, c = w.shape
        return jnp.pad(w, ((0, rows - r), (0, cols - c))).astype(compute_dtype)

    def padb(b, cols):
        b = b.reshape(1, -1)
        return jnp.pad(b, ((0, 0), (0, cols - b.shape[1]))).astype(jnp.float32)

    operands = (
        # w1 keeps its un-padded contraction dim: x streams in un-padded too.
        padw(params["w1"], in_dim, hid_pad), padb(params["b1"], hid_pad),
        padw(params["w2"], hid_pad, hid_pad), padb(params["b2"], hid_pad),
        padw(params["w3"], hid_pad, hid_pad), padb(params["b3"], hid_pad),
        padw(params["w4"], hid_pad, out_pad), padb(params["b4"], out_pad),
    )
    meta = dict(input_size=in_dim, hidden_size=hid, num_classes=ncls,
                hid_pad=hid_pad, out_pad=out_pad,
                compute_dtype=jnp.dtype(compute_dtype))
    return {"operands": operands, "meta": meta}


# --------------------------------- kernel ------------------------------------

def mlp_kernel(x_ref, w1_ref, b1_ref, w2_ref, b2_ref, w3_ref, b3_ref,
               w4_ref, b4_ref, out_ref):
    """Entire 4-layer forward fused in one kernel; weights resident in VMEM.

    x arrives in f32 and is cast to the MXU compute dtype (bf16) in-kernel;
    matmuls accumulate in f32; bias-add + LeakyReLU run in f32 on the VPU
    (v5e has no bf16 VALU); activations are cast back to the compute dtype
    only to feed the next matmul.
    """
    cdt = w1_ref.dtype
    x = x_ref[...].astype(cdt)

    h = jnp.dot(x, w1_ref[...], preferred_element_type=jnp.float32)
    h = _leaky_relu(h + b1_ref[...]).astype(cdt)

    h = jnp.dot(h, w2_ref[...], preferred_element_type=jnp.float32)
    h = _leaky_relu(h + b2_ref[...]).astype(cdt)

    h = jnp.dot(h, w3_ref[...], preferred_element_type=jnp.float32)
    h = _leaky_relu(h + b3_ref[...]).astype(cdt)

    out = jnp.dot(h, w4_ref[...], preferred_element_type=jnp.float32) + b4_ref[...]
    out_ref[...] = out.astype(out_ref.dtype)


# ------------------------------ tiling policy --------------------------------

def _choose_tile_b(B, in_dim, hid_pad, out_pad, act_bytes, data_budget,
                   num_tc, weight_buffers):
    """Pick (tile_b, n_tiles). Returns None if the resident weights alone do not
    fit the VMEM data budget (caller falls back to a non-resident schedule)."""
    row_align = 16 if act_bytes < 4 else 8

    w_bytes = act_bytes * (in_dim * hid_pad + 2 * hid_pad * hid_pad + hid_pad * out_pad)
    b_bytes = 4 * (3 * hid_pad + out_pad)
    budget = data_budget - weight_buffers * (w_bytes + b_bytes)
    if budget <= 0:
        return None

    # Per batch row: streamed x/out tiles (double-buffered by the pipeline) plus
    # ~3 live activation slabs in the body (f32 acc, bf16 cast, next f32 acc).
    per_row = (in_dim * 4 * 2
               + in_dim * act_bytes
               + out_pad * 4 * 2
               + hid_pad * (4 + act_bytes + 4))
    max_rows = (budget // per_row) // row_align * row_align
    if max_rows < row_align:
        return None

    tile = max(row_align, min(_round_up(B, row_align), max_rows, _MAX_TILE_B))
    n_tiles = pl.cdiv(B, tile)

    if num_tc >= 2 and B > num_tc * row_align:
        # Megacore (v7x): use a multiple of num_tc batch tiles so both
        # TensorCores get the same amount of work.  On 1-TC chips the grid is a
        # serial loop, so we keep the single largest tile instead.
        n_tiles = max(num_tc, _round_up(n_tiles, num_tc))
        tile = max(row_align, _round_up(pl.cdiv(B, n_tiles), row_align))

    return tile, n_tiles


def _fallback_forward(x, operands, compute_dtype):
    """Plain-XLA path for when the resident-weight scheme cannot fit VMEM."""
    w1, b1, w2, b2, w3, b3, w4, b4 = operands
    h = x.astype(compute_dtype)
    for w, b in ((w1, b1), (w2, b2), (w3, b3)):
        h = _leaky_relu(jnp.dot(h, w, preferred_element_type=jnp.float32) + b)
        h = h.astype(compute_dtype)
    return jnp.dot(h, w4, preferred_element_type=jnp.float32) + b4


# -------------------------------- forward ------------------------------------

def neural_net_forward(x, prepped, *, tile_b=None, interpret=False):
    """x: (B, input_size) f32.  prepped: output of prepare_params.

    Returns (B, num_classes) f32, matching NeuralNet.forward semantics.
    """
    operands = prepped["operands"]
    meta = prepped["meta"]
    B, in_dim = x.shape
    if in_dim != meta["input_size"]:
        raise ValueError(f"x has {in_dim} features, model expects {meta['input_size']}")

    hid_pad, out_pad, ncls = meta["hid_pad"], meta["out_pad"], meta["num_classes"]
    cdt = meta["compute_dtype"]
    act_bytes = cdt.itemsize

    vmem_limit, data_budget = _vmem_config()
    single_buf = (not interpret) and _single_buffered_weights_supported()
    weight_buffers = 1 if single_buf else 2
    num_tc = _num_tensorcores()
    row_align = 16 if act_bytes < 4 else 8

    if tile_b is not None:
        # Validate caller-provided tile against the (8/16, 128) tiling rule.
        tile_b = max(row_align, _round_up(int(tile_b), row_align))
        choice = (tile_b, pl.cdiv(B, tile_b))
    else:
        choice = _choose_tile_b(B, in_dim, hid_pad, out_pad, act_bytes,
                                data_budget, num_tc, weight_buffers)

    if choice is None:
        # Resident weights don't fit VMEM (very large hidden sizes): degrade
        # gracefully to plain XLA instead of a Mosaic VMEM OOM.
        # TODO(synk): per-layer K/N-tiled (emit_pipeline) Pallas schedule here.
        return _fallback_forward(x, operands, cdt)[:, :ncls]

    tile_b, n_tiles = choice
    B_pad = tile_b * n_tiles

    # x stays f32 and un-padded along features; only batch rows are padded so
    # the grid has no ragged last tile.  bf16 cast happens inside the kernel.
    x_p = x if B_pad == B else jnp.pad(x, ((0, B_pad - B), (0, 0)))

    def const_spec(shape):
        index_map = lambda i: (0,) * len(shape)
        if single_buf:
            # Constant-index resident blocks don't need a second pipeline buffer.
            return pl.BlockSpec(shape, index_map, pipeline_mode=pl.Buffered(1))
        return pl.BlockSpec(shape, index_map)

    in_specs = [pl.BlockSpec((tile_b, in_dim), lambda i: (i, 0))]
    in_specs += [const_spec(op.shape) for op in operands]
    out_spec = pl.BlockSpec((tile_b, out_pad), lambda i: (i, 0))

    out_p = pl.pallas_call(
        mlp_kernel,
        out_shape=jax.ShapeDtypeStruct((B_pad, out_pad), jnp.float32),
        grid_spec=pltpu.PrefetchScalarGridSpec(
            num_scalar_prefetch=0,
            grid=(n_tiles,),
            in_specs=in_specs,
            out_specs=out_spec,
        ),
        compiler_params=pltpu.CompilerParams(
            dimension_semantics=("parallel",),
            vmem_limit_bytes=vmem_limit,
        ),
        interpret=interpret,
    )(x_p, *operands)

    return out_p[:B, :ncls]


# ------------------------- init & pure-JAX reference -------------------------

def init_params(key, input_size, hidden_size, num_classes):
    """Deterministic init mimicking nn.Linear's uniform(-1/sqrt(fan_in), +).
    Weights stored transposed: (in_features, out_features)."""
    dims = [(input_size, hidden_size),
            (hidden_size, hidden_size),
            (hidden_size, hidden_size),
            (hidden_size, num_classes)]
    params = {}
    for idx, (fan_in, fan_out) in enumerate(dims, start=1):
        key, kw, kb = jax.random.split(key, 3)
        bound = 1.0 / jnp.sqrt(jnp.float32(fan_in))
        params[f"w{idx}"] = jax.random.uniform(
            kw, (fan_in, fan_out), jnp.float32, -bound, bound)
        params[f"b{idx}"] = jax.random.uniform(
            kb, (1, fan_out), jnp.float32, -bound, bound)
    return params


def reference_forward(x, params, compute_dtype=jnp.float32):
    """Pure-JAX reference. With compute_dtype=bf16 it emulates the kernel's
    precision (bf16 matmul inputs, f32 accumulation, f32 bias/LeakyReLU)."""
    h = x
    for idx in range(1, 5):
        w = params[f"w{idx}"].astype(compute_dtype)
        h = jnp.dot(h.astype(compute_dtype), w,
                    preferred_element_type=jnp.float32) + params[f"b{idx}"]
        if idx < 4:
            h = _leaky_relu(h)
    return h


if __name__ == "__main__":
    key = jax.random.PRNGKey(0)
    k_x, k_p = jax.random.split(key)

    batch = 8
    input_size = 32
    hidden_size = 32
    num_classes = 8

    x = jax.random.normal(k_x, (batch, input_size), jnp.float32)
    params = init_params(k_p, input_size, hidden_size, num_classes)

    # One-time prep (model-load time): padded, bf16 weights + f32 biases.
    prepped = prepare_params(params, compute_dtype=jnp.bfloat16)

    out = neural_net_forward(x, prepped)
    out = jax.block_until_ready(out)
    assert out.shape == (batch, num_classes)

    # Tight check against a reference that uses the same bf16/f32 mixed precision.
    ref_bf16 = reference_forward(x, params, compute_dtype=jnp.bfloat16)
    assert jnp.allclose(out, ref_bf16, atol=1e-4, rtol=1e-4), "mismatch vs bf16 reference"

    # Loose sanity check against the pure-f32 PyTorch-equivalent math
    # (difference is only bf16 input/weight quantization).
    ref_f32 = reference_forward(x, params, compute_dtype=jnp.float32)
    assert jnp.allclose(out, ref_f32, atol=5e-2, rtol=5e-2), "mismatch vs f32 reference"

    print("KERNEL_OK")
</pallas_src>

<mosaic_0001>
module attributes {stable_mosaic.version = 11 : i64} {
  func.func @_probe(%arg0: i32, %arg1: memref<8x128xf32, #tpu.memory_space<vmem>>, %arg2: memref<8x128xf32, #tpu.memory_space<vmem>>) attributes {dimension_semantics = [#tpu.dimension_semantics<arbitrary>], iteration_bounds = array<i64: 2>, scalar_prefetch = 0 : i64, scratch_operands = 0 : i64, tpu.core_type = #tpu.core_type<tc>, window_params = [{pipeline_mode = #tpu.pipeline_mode<synchronous>, transform_indices = @transform_0, window_bounds = array<i64: 8, 128>}, {transform_indices = @transform_1, window_bounds = array<i64: 8, 128>}]} {
    %c0 = arith.constant 0 : index
    %c0_0 = arith.constant 0 : index
    %0 = vector.load %arg1[%c0, %c0_0] : memref<8x128xf32, #tpu.memory_space<vmem>>, vector<8x128xf32>
    %cst = arith.constant 1.000000e+00 : f32
    %1 = vector.broadcast %cst : f32 to vector<8x128xf32>
    %2 = arith.addf %0, %1 : vector<8x128xf32>
    %c0_1 = arith.constant 0 : index
    %c0_2 = arith.constant 0 : index
    %3 = vector.load %arg2[%c0_1, %c0_2] : memref<8x128xf32, #tpu.memory_space<vmem>>, vector<8x128xf32>
    tpu.vector_store %arg2[%c0_1, %c0_2], %2 {strides = array<i32>} : memref<8x128xf32, #tpu.memory_space<vmem>>, vector<8x128xf32>,
    return
  }
  func.func @transform_0(%arg0: i32) -> (i32, i32) {
    %c0_i32 = arith.constant 0 : i32
    %c0_i32_0 = arith.constant 0 : i32
    %c0_i32_1 = arith.constant 0 : i32
    return %c0_i32, %c0_i32_0 : i32, i32
  }
  func.func @transform_1(%arg0: i32) -> (i32, i32) {
    %c0_i32 = arith.constant 0 : i32
    %c0_i32_0 = arith.constant 0 : i32
    return %arg0, %c0_i32 : i32, i32
  }
}

module attributes {stable_mosaic.version = 11 : i64} {
  func.func @mlp_kernel(%arg0: i32, %arg1: memref<16x32xf32, #tpu.memory_space<vmem>>, %arg2: memref<32x128xbf16, #tpu.memory_space<vmem>>, %arg3: memref<1x128xf32, #tpu.memory_space<vmem>>, %arg4: memref<128x128xbf16, #tpu.memory_space<vmem>>, %arg5: memref<1x128xf32, #tpu.memory_space<vmem>>, %arg6: memref<128x128xbf16, #tpu.memory_space<vmem>>, %arg7: memref<1x128xf32, #tpu.memory_space<vmem>>, %arg8: memref<128x128xbf16, #tpu.memory_space<vmem>>, %arg9: memref<1x128xf32, #tpu.memory_space<vmem>>, %arg10: memref<16x128xf32, #tpu.memory_space<vmem>>) attributes {dimension_semantics = [#tpu.dimension_semantics<parallel>], iteration_bounds = array<i64: 1>, scalar_prefetch = 0 : i64, scratch_operands = 0 : i64, tpu.core_type = #tpu.core_type<tc>, window_params = [{transform_indices = @transform_0, window_bounds = array<i64: 16, 32>}, {pipeline_mode = #tpu.pipeline_mode<synchronous>, transform_indices = @transform_1, window_bounds = array<i64: 32, 128>}, {pipeline_mode = #tpu.pipeline_mode<synchronous>, transform_indices = @transform_2, window_bounds = array<i64: 1, 128>}, {pipeline_mode = #tpu.pipeline_mode<synchronous>, transform_indices = @transform_3, window_bounds = array<i64: 128, 128>}, {pipeline_mode = #tpu.pipeline_mode<synchronous>, transform_indices = @transform_4, window_bounds = array<i64: 1, 128>}, {pipeline_mode = #tpu.pipeline_mode<synchronous>, transform_indices = @transform_5, window_bounds = array<i64: 128, 128>}, {pipeline_mode = #tpu.pipeline_mode<synchronous>, transform_indices = @transform_6, window_bounds = array<i64: 1, 128>}, {pipeline_mode = #tpu.pipeline_mode<synchronous>, transform_indices = @transform_7, window_bounds = array<i64: 128, 128>}, {pipeline_mode = #tpu.pipeline_mode<synchronous>, transform_indices = @transform_8, window_bounds = array<i64: 1, 128>}, {transform_indices = @transform_9, window_bounds = array<i64: 16, 128>}]} {
    %c0 = arith.constant 0 : index
    %c0_0 = arith.constant 0 : index
    %0 = vector.load %arg1[%c0, %c0_0] : memref<16x32xf32, #tpu.memory_space<vmem>>, vector<16x32xf32>
    %1 = arith.truncf %0 : vector<16x32xf32> to vector<16x32xbf16>
    %c0_1 = arith.constant 0 : index
    %c0_2 = arith.constant 0 : index
    %2 = vector.load %arg2[%c0_1, %c0_2] : memref<32x128xbf16, #tpu.memory_space<vmem>>, vector<32x128xbf16>
    %cst = arith.constant dense<0.000000e+00> : vector<16x128xf32>
    %3 = tpu.matmul %1, %2, %cst {dimension_numbers = #tpu.dot_dimension_numbers<[1], [0], [0], [1], [0, 0, 1, 1], [], []>} : vector<16x32xbf16>, vector<32x128xbf16>, vector<16x128xf32> -> vector<16x128xf32>
    %c0_3 = arith.constant 0 : index
    %c0_4 = arith.constant 0 : index
    %4 = vector.load %arg3[%c0_3, %c0_4] : memref<1x128xf32, #tpu.memory_space<vmem>>, vector<1x128xf32>
    %5 = vector.broadcast %4 : vector<1x128xf32> to vector<16x128xf32>
    %6 = arith.addf %3, %5 : vector<16x128xf32>
    %cst_5 = arith.constant 0.000000e+00 : f32
    %7 = vector.broadcast %cst_5 : f32 to vector<16x128xf32>
    %8 = arith.cmpf ogt, %6, %7 : vector<16x128xf32>
    %cst_6 = arith.constant 0.00999999977 : f32
    %9 = vector.broadcast %cst_6 : f32 to vector<16x128xf32>
    %10 = arith.mulf %9, %6 : vector<16x128xf32>
    %11 = arith.select %8, %6, %10 : vector<16x128xi1>, vector<16x128xf32>
    %12 = arith.truncf %11 : vector<16x128xf32> to vector<16x128xbf16>
    %c0_7 = arith.constant 0 : index
    %c0_8 = arith.constant 0 : index
    %13 = vector.load %arg4[%c0_7, %c0_8] : memref<128x128xbf16, #tpu.memory_space<vmem>>, vector<128x128xbf16>
    %cst_9 = arith.constant dense<0.000000e+00> : vector<16x128xf32>
    %14 = tpu.matmul %12, %13, %cst_9 {dimension_numbers = #tpu.dot_dimension_numbers<[1], [0], [0], [1], [0, 0, 1, 1], [], []>} : vector<16x128xbf16>, vector<128x128xbf16>, vector<16x128xf32> -> vector<16x128xf32>
    %c0_10 = arith.constant 0 : index
    %c0_11 = arith.constant 0 : index
    %15 = vector.load %arg5[%c0_10, %c0_11] : memref<1x128xf32, #tpu.memory_space<vmem>>, vector<1x128xf32>
    %16 = vector.broadcast %15 : vector<1x128xf32> to vector<16x128xf32>
    %17 = arith.addf %14, %16 : vector<16x128xf32>
    %cst_12 = arith.constant 0.000000e+00 : f32
    %18 = vector.broadcast %cst_12 : f32 to vector<16x128xf32>
    %19 = arith.cmpf ogt, %17, %18 : vector<16x128xf32>
    %cst_13 = arith.constant 0.00999999977 : f32
    %20 = vector.broadcast %cst_13 : f32 to vector<16x128xf32>
    %21 = arith.mulf %20, %17 : vector<16x128xf32>
    %22 = arith.select %19, %17, %21 : vector<16x128xi1>, vector<16x128xf32>
    %23 = arith.truncf %22 : vector<16x128xf32> to vector<16x128xbf16>
    %c0_14 = arith.constant 0 : index
    %c0_15 = arith.constant 0 : index
    %24 = vector.load %arg6[%c0_14, %c0_15] : memref<128x128xbf16, #tpu.memory_space<vmem>>, vector<128x128xbf16>
    %cst_16 = arith.constant dense<0.000000e+00> : vector<16x128xf32>
    %25 = tpu.matmul %23, %24, %cst_16 {dimension_numbers = #tpu.dot_dimension_numbers<[1], [0], [0], [1], [0, 0, 1, 1], [], []>} : vector<16x128xbf16>, vector<128x128xbf16>, vector<16x128xf32> -> vector<16x128xf32>
    %c0_17 = arith.constant 0 : index
    %c0_18 = arith.constant 0 : index
    %26 = vector.load %arg7[%c0_17, %c0_18] : memref<1x128xf32, #tpu.memory_space<vmem>>, vector<1x128xf32>
    %27 = vector.broadcast %26 : vector<1x128xf32> to vector<16x128xf32>
    %28 = arith.addf %25, %27 : vector<16x128xf32>
    %cst_19 = arith.constant 0.000000e+00 : f32
    %29 = vector.broadcast %cst_19 : f32 to vector<16x128xf32>
    %30 = arith.cmpf ogt, %28, %29 : vector<16x128xf32>
    %cst_20 = arith.constant 0.00999999977 : f32
    %31 = vector.broadcast %cst_20 : f32 to vector<16x128xf32>
    %32 = arith.mulf %31, %28 : vector<16x128xf32>
    %33 = arith.select %30, %28, %32 : vector<16x128xi1>, vector<16x128xf32>
    %34 = arith.truncf %33 : vector<16x128xf32> to vector<16x128xbf16>
    %c0_21 = arith.constant 0 : index
    %c0_22 = arith.constant 0 : index
    %35 = vector.load %arg8[%c0_21, %c0_22] : memref<128x128xbf16, #tpu.memory_space<vmem>>, vector<128x128xbf16>
    %cst_23 = arith.constant dense<0.000000e+00> : vector<16x128xf32>
    %36 = tpu.matmul %34, %35, %cst_23 {dimension_numbers = #tpu.dot_dimension_numbers<[1], [0], [0], [1], [0, 0, 1, 1], [], []>} : vector<16x128xbf16>, vector<128x128xbf16>, vector<16x128xf32> -> vector<16x128xf32>
    %c0_24 = arith.constant 0 : index
    %c0_25 = arith.constant 0 : index
    %37 = vector.load %arg9[%c0_24, %c0_25] : memref<1x128xf32, #tpu.memory_space<vmem>>, vector<1x128xf32>
    %38 = vector.broadcast %37 : vector<1x128xf32> to vector<16x128xf32>
    %39 = arith.addf %36, %38 : vector<16x128xf32>
    %c0_26 = arith.constant 0 : index
    %c0_27 = arith.constant 0 : index
    %40 = vector.load %arg10[%c0_26, %c0_27] : memref<16x128xf32, #tpu.memory_space<vmem>>, vector<16x128xf32>
    tpu.vector_store %arg10[%c0_26, %c0_27], %39 {strides = array<i32>} : memref<16x128xf32, #tpu.memory_space<vmem>>, vector<16x128xf32>,
    return
  }
  func.func @transform_0(%arg0: i32) -> (i32, i32) {
    %c0_i32 = arith.constant 0 : i32
    %c0_i32_0 = arith.constant 0 : i32
    return %arg0, %c0_i32 : i32, i32
  }
  func.func @transform_1(%arg0: i32) -> (i32, i32) {
    %c0_i32 = arith.constant 0 : i32
    %c0_i32_0 = arith.constant 0 : i32
    %c0_i32_1 = arith.constant 0 : i32
    return %c0_i32, %c0_i32_0 : i32, i32
  }
  func.func @transform_2(%arg0: i32) -> (i32, i32) {
    %c0_i32 = arith.constant 0 : i32
    %c0_i32_0 = arith.constant 0 : i32
    %c0_i32_1 = arith.constant 0 : i32
    return %c0_i32, %c0_i32_0 : i32, i32
  }
  func.func @transform_3(%arg0: i32) -> (i32, i32) {
    %c0_i32 = arith.constant 0 : i32
    %c0_i32_0 = arith.constant 0 : i32
    %c0_i32_1 = arith.constant 0 : i32
    return %c0_i32, %c0_i32_0 : i32, i32
  }
  func.func @transform_4(%arg0: i32) -> (i32, i32) {
    %c0_i32 = arith.constant 0 : i32
    %c0_i32_0 = arith.constant 0 : i32
    %c0_i32_1 = arith.constant 0 : i32
    return %c0_i32, %c0_i32_0 : i32, i32
  }
  func.func @transform_5(%arg0: i32) -> (i32, i32) {
    %c0_i32 = arith.constant 0 : i32
    %c0_i32_0 = arith.constant 0 : i32
    %c0_i32_1 = arith.constant 0 : i32
    return %c0_i32, %c0_i32_0 : i32, i32
  }
  func.func @transform_6(%arg0: i32) -> (i32, i32) {
    %c0_i32 = arith.constant 0 : i32
    %c0_i32_0 = arith.constant 0 : i32
    %c0_i32_1 = arith.constant 0 : i32
    return %c0_i32, %c0_i32_0 : i32, i32
  }
  func.func @transform_7(%arg0: i32) -> (i32, i32) {
    %c0_i32 = arith.constant 0 : i32
    %c0_i32_0 = arith.constant 0 : i32
    %c0_i32_1 = arith.constant 0 : i32
    return %c0_i32, %c0_i32_0 : i32, i32
  }
  func.func @transform_8(%arg0: i32) -> (i32, i32) {
    %c0_i32 = arith.constant 0 : i32
    %c0_i32_0 = arith.constant 0 : i32
    %c0_i32_1 = arith.constant 0 : i32
    return %c0_i32, %c0_i32_0 : i32, i32
  }
  func.func @transform_9(%arg0: i32) -> (i32, i32) {
    %c0_i32 = arith.constant 0 : i32
    %c0_i32_0 = arith.constant 0 : i32
    return %arg0, %c0_i32 : i32, i32
  }
}

</mosaic_0001>

<bundles_post_ra>
// kernel: tpu_custom_call.1
= control target key start
LH: loop header
LB: loop body
LE: loop exit
PB: predicated region body
PF: predicated region fallthrough
CT: control target
= control target key end

     0   :  { %6 = vsyncpa [#allocation3], 0  ;;  %s448_s0 = inlined_call_operand.hbm [shape: f32[8,128], index: 0, kind: input, shape index: {}]   ;;  %s449_s1 = inlined_call_operand.hbm [shape: f32[16,128], index: 1, kind: output, shape index: {}]  }
   0x1   :  { %7 = vsyncpa [#allocation4], 0 }
   0x2   :  { %9 = vsyncpa [#allocation4 + $0x1], 0  ;;  %s348_s6 = smov 0   ;;  %s350_s7 = smov 0  }
   0x3   :  { %s352_s8 = smov 0   ;;  %s354_s9 = smov 0  }
   0x4 LB: > { %s369_s10 = sadd.s32 4294967295, %s334_s9   ;;  %s184_s11 = sadd.s32 4294967294, %s334_s9   ;;  %s334_s9 = sphi %s354_s9, %s457_s9   ;;  %s330_s8 = sphi %s352_s8, %s456_s8   ;;  %s326_s7 = sphi %s350_s7, %s455_s7   ;;  %s322_s6 = sphi %s348_s6, %s454_s6  }
   0x5   : > { %s373_s12 = sadd.s32 1, %s334_s9   ;;  %s43_s13 = sadd.s32 1, %s330_s8 }
   0x6   : > { %s40_s14 = ssub.s32 %s334_s9, %s373_s12  ;;  %p53_p0 = scmp.ne.s32.totalorder %s330_s8, %s326_s7 }
   0x7   : > { %p41_p1 = scmp.eq.s32.totalorder %s40_s14, 0  ;;  %p54_p2 = scmp.eq.s32.totalorder %s369_s10, 1 }
   0x8   : > { %p59_p3 = scmp.ne.s32.totalorder %s326_s7, %s322_s6  ;;  %p60_p4 = scmp.eq.s32.totalorder %s184_s11, 1 }
   0x9   : > { %s384_s15 = scalar_select %p41_p1, %s330_s8, %s43_s13  }
   0xa   : > { %p386_p5 = por %p54_p2, %p53_p0  ;;  %p390_p6 = por %p60_p4, %p59_p3 }
   0xb   : > { %p185_p7 = scmp.ge.s32.totalorder %s334_s9, 1  ;;  %p67_p8 = scmp.lt.s32.totalorder %s334_s9, 3 }
   0xc   : > { %s451_s17 = scalar_select %p390_p6, 1, 0 }
   0xd   : > { %p208_p9 = scmp.eq.s32.totalorder %s369_s10, 0  ;;  %p397_p10 = pnand %p185_p7, %p67_p8 }
   0xe   : > { %s336_s19 = smov [#allocation2]  }
   0xf   : > { %s80_s20 = sshll.u32 %s336_s19, 4  ;;  %p200_p11 = pneg %p397_p10  ;;  %s81_s20 = int_to_ptr.vmem [resolvable:$true] %s80_s20 }
  0x10   : > { %s255_s21 = scalar_lea.vmem %s81_s20, 128  ;;  %p263_p3 = scmp.lt.s32.totalorder %s81_s20, %s81_s20 }
  0x11   : > { %p201_p12 = pnand %p208_p9, %p200_p11  ;;  %p256_p0 = scmp.ne.s32.totalorder %s81_s20, %s255_s21 }
  0x12   : > { %p264_p4 = scmp.lt.s32.totalorder %s255_s21, %s255_s21 }
  0x13   : > { %p246_p13 = pneg %p201_p12 }
  0x14   : > { %p265_p6 = por %p264_p4, %p263_p3 }
  0x15   : > { %p258_p1 = pnand %p256_p0, %p246_p13 }
  0x17   : > { %p259_p2 = pneg %p258_p1 }
  0x19   : > { %p266_p7 = pnand %p265_p6, %p259_p2 }
  0x1b   : > { %269 = shalt.err (!%p266_p7)
}
  0x1c   : > { %203 = dma.hbm_to_vmem [thread:$0]  (!%p201_p12), %s448_s0, 128, %s81_s20, [#allocation3]  }
  0x1d   : > { %93 = sbr.rel (%p397_p10) target bundleno = 60 (0x3c), region = 24 }
  0x22   : > { %313 = dma.done.wait (%p208_p9), [#allocation3], 128  }
  0x23   : > { %315 = vsyncadd (%p208_p9), [#allocation3], 4294967168  ;;  %s105_s24 = sand.u32 1, %s326_s7   ;;  %s191_s28 = sshll.u32 %s369_s10, 7  ;;  %v108_v0 = vld [vmem:[#allocation2] sm:$0xff] }
  0x24   : > { %s189_s25 = sshll.u32 %s105_s24, 3  ;;  %v109_v1 = vadd.f32 1.0, %v108_v0  ;;  %s123_s2 = scalar_lea.hbm %s449_s1, %s191_s28 }
  0x25   : > { %s107_s26 = scalar_lea.vmem [#allocation5], %s189_s25  ;;  %s112_s3 = scalar_lea.sflag [#allocation4], %s105_s24 }
  0x26   : > { %s125_s27 = sshll.u32 %s107_s26, 4  ;;  %110 = vst [vmem:[%s107_s26] sm:$0xff] %v109_v1  ;;  %s337_s5 = smov [#allocation5]   ;;  %s126_s27 = int_to_ptr.vmem [resolvable:$true] %s125_s27 }
  0x27   : > { %s270_s4 = scalar_lea.vmem %s126_s27, 128  ;;  %s274_s11 = sshll.u32 %s337_s5, 4  ;;  %s275_s11 = int_to_ptr.vmem [resolvable:$false] %s274_s11 }
  0x28   : > { %p271_p6 = scmp.ne.s32.totalorder %s126_s27, %s270_s4  ;;  %s276_s13 = scalar_lea.vmem %s275_s11, 256 }
  0x29   : > { %p277_p10 = scmp.lt.s32.totalorder %s126_s27, %s275_s11  ;;  %p278_p11 = scmp.lt.s32.totalorder %s276_s13, %s270_s4 }
  0x2a   : > { %p272_p8 = pnand %p271_p6, %p386_p5 }
  0x2b   : > { %p279_p12 = por %p278_p11, %p277_p10 }
  0x2c   : > { %p273_p9 = pneg %p272_p8 }
  0x2e   : > { %p280_p13 = pnand %p279_p12, %p273_p9 }
  0x30   : > { %283 = shalt.err (!%p280_p13)
}
  0x31   : > { %s284_s10 = scalar_lea.hbm %s123_s2, 128  ;;  %s288_s19 = scalar_lea.hbm %s449_s1, 256 }
  0x32   : > { %p285_p0 = scmp.ne.s32.totalorder %s123_s2, %s284_s10  ;;  %p289_p3 = scmp.lt.s32.totalorder %s123_s2, %s449_s1 }
  0x33   : > { %p290_p4 = scmp.lt.s32.totalorder %s288_s19, %s284_s10 }
  0x34   : > { %p286_p1 = pnand %p285_p0, %p386_p5 }
  0x35   : > { %p291_p7 = por %p290_p4, %p289_p3 }
  0x36   : > { %p287_p2 = pneg %p286_p1 }
  0x38   : > { %p292_p6 = pnand %p291_p7, %p287_p2 }
  0x3a   : > { %295 = shalt.err (!%p292_p6)
}
  0x3b   : > { %198 = dma.vmem_to_hbm [thread:$0]  (%p386_p5), %s126_s27, 128, %s123_s2, %s112_s3  }
  0x3c PF: > { %p210_p8 = scmp.ge.s32.totalorder %s334_s9, 2  ;;  %s137_s22 = sand.u32 1, %s322_s6  }
  0x3d   : > { %p453_p9 = scmp.ne.s32.totalorder %s451_s17, 0  ;;  %s138_s23 = scalar_lea.sflag [#allocation4], %s137_s22 }
  0x3f   : > { %p205_p10 = pnand %p210_p8, %p453_p9 }
  0x41   : > { %p206_p11 = pneg %p205_p10 }
  0x43   : > { %317 = dma.done.wait (%p206_p11), %s138_s23, 128  }
  0x44   : > { %319 = vsyncadd (%p206_p11), %s138_s23, 4294967168  ;;  %p12_p12 = scmp.ge.s32.totalorder %s373_s12, 4   ;;  %s454_s6 = smov %s326_s7 }
  0x45   : > { %s455_s7 = smov %s330_s8  ;;  %s456_s8 = smov %s384_s15 }
  0x46   : > { %s457_s9 = smov %s373_s12  ;;  %14 = sbr.rel (!%p12_p12) target bundleno = 4 (0x4), region = 61 }
  0x4b   :  { %143 = vsyncpa [#allocation3], 1 }
  0x4c   :  { %145 = vsyncpa [#allocation3 + $0x1], 1 }
  0x4d   :  { %146 = vsyncpa [#allocation4], 1 }
  0x4e   :  { %148 = vsyncpa [#allocation4 + $0x1], 1 }

// kernel: tpu_custom_call.1
= control target key start
LH: loop header
LB: loop body
LE: loop exit
PB: predicated region body
PF: predicated region fallthrough
CT: control target
= control target key end

     0   :  { %14 = vsyncpa [#allocation3], 0  ;;  %s990_s0 = inlined_call_operand.hbm [shape: f32[16,32], index: 0, kind: input, shape index: {}]   ;;  %s991_s1 = inlined_call_operand.hbm [shape: bf16[32,128], index: 1, kind: input, shape index: {}]   ;;  %s992_s2 = inlined_call_operand.vmem [shape: f32[1,128], index: 2, kind: input, shape index: {}]   ;;  %s993_s3 = inlined_call_operand.hbm [shape: bf16[128,128], index: 3, kind: input, shape index: {}]   ;;  %s994_s4 = inlined_call_operand.vmem [shape: f32[1,128], index: 4, kind: input, shape index: {}]   ;;  %s995_s5 = inlined_call_operand.hbm [shape: bf16[128,128], index: 5, kind: input, shape index: {}]   ;;  %s996_s6 = inlined_call_operand.vmem [shape: f32[1,128], index: 6, kind: input, shape index: {}]   ;;  %s997_s7 = inlined_call_operand.hbm [shape: bf16[128,128], index: 7, kind: input, shape index: {}]   ;;  %s998_s8 = inlined_call_operand.vmem [shape: f32[1,128], index: 8, kind: input, shape index: {}]   ;;  %s999_s9 = inlined_call_operand.hbm [shape: f32[16,128], index: 9, kind: output, shape index: {}]  }
   0x1   :  { %15 = vsyncpa [#allocation6], 0 }
   0x2   :  { %16 = vsyncpa [#allocation9], 0 }
   0x3   :  { %17 = vsyncpa [#allocation4], 0  ;;  %s846_s30 = smov [#allocation5]  }
   0x4   :  { %s35_s10 = sshll.u32 %s846_s30, 4  ;;  %s36_s10 = int_to_ptr.vmem [resolvable:$true] %s35_s10 }
   0x5   :  { %s726_s11 = scalar_lea.vmem %s36_s10, 256  ;;  %p731_p1 = scmp.lt.s32.totalorder %s36_s10, %s36_s10 }
   0x6   :  { %p727_p0 = scmp.ne.s32.totalorder %s36_s10, %s726_s11  ;;  %p732_p2 = scmp.lt.s32.totalorder %s726_s11, %s726_s11 }
   0x8   :  { %p733_p3 = por %p732_p2, %p731_p1 }
   0xa   :  { %p734_p4 = pnand %p733_p3, %p727_p0 }
   0xc   :  { %737 = shalt.err (!%p734_p4)
}
   0xd   :  { %s847_s12 = smov 64   ;;  %s848_s13 = smov 4  }
   0xe   :  { %41 = dma.hbm_to_vmem [thread:$0]  %s991_s1, 256, %s36_s10, [#allocation6], %s847_s12, %s847_s12, %s848_s13  }
   0xf   :  { %s849_s16 = smov [#allocation8]   ;;  %s850_s18 = smov [#allocation2]  }
  0x10   :  { %s63_s17 = sshll.u32 %s849_s16, 4  ;;  %s23_s19 = sshll.u32 %s850_s18, 4  ;;  %s64_s17 = int_to_ptr.vmem [resolvable:$true] %s63_s17  ;;  %s24_s19 = int_to_ptr.vmem [resolvable:$true] %s23_s19 }
  0x11   :  { %s746_s20 = scalar_lea.vmem %s64_s17, 1024  ;;  %p751_p6 = scmp.lt.s32.totalorder %s64_s17, %s64_s17 }
  0x12   :  { %p747_p5 = scmp.ne.s32.totalorder %s64_s17, %s746_s20  ;;  %p752_p7 = scmp.lt.s32.totalorder %s746_s20, %s746_s20 }
  0x14   :  { %p753_p8 = por %p752_p7, %p751_p6 }
  0x16   :  { %p754_p9 = pnand %p753_p8, %p747_p5 }
  0x18   :  { %757 = shalt.err (!%p754_p9)
}
  0x19   :  { %69 = dma.hbm_to_vmem [thread:$0]  %s995_s5, 1024, %s64_s17, [#allocation9], %s847_s12, %s847_s12, %s848_s13  }
  0x1a   :  { %s766_s1 = scalar_lea.vmem %s24_s19, 256  ;;  %p771_p11 = scmp.lt.s32.totalorder %s24_s19, %s24_s19 }
  0x1b   :  { %p767_p10 = scmp.ne.s32.totalorder %s24_s19, %s766_s1  ;;  %p772_p12 = scmp.lt.s32.totalorder %s766_s1, %s766_s1 }
  0x1d   :  { %p773_p13 = por %p772_p12, %p771_p11 }
  0x1f   :  { %p774_p0 = pnand %p773_p13, %p767_p10 }
  0x21   :  { %777 = shalt.err (!%p774_p0)
}
  0x22   :  { %s851_s23 = smov 128   ;;  %s852_s24 = smov 8  }
  0x23   :  { %29 = dma.hbm_to_vmem [thread:$0]  %s990_s0, 256, %s24_s19, [#allocation3], %s851_s23, %s851_s23, %s852_s24  }
  0x24   :  { %s853_s27 = smov [#allocation7]   ;;  %s854_s5 = smov [#allocation10]  }
  0x25   :  { %s49_s28 = sshll.u32 %s853_s27, 4  ;;  %s77_s29 = sshll.u32 %s854_s5, 4  ;;  %s50_s28 = int_to_ptr.vmem [resolvable:$true] %s49_s28  ;;  %s78_s29 = int_to_ptr.vmem [resolvable:$true] %s77_s29 }
  0x26   :  { %s786_s30 = scalar_lea.vmem %s50_s28, 1024  ;;  %p791_p2 = scmp.lt.s32.totalorder %s50_s28, %s50_s28 }
  0x27   :  { %p787_p1 = scmp.ne.s32.totalorder %s50_s28, %s786_s30  ;;  %p792_p3 = scmp.lt.s32.totalorder %s786_s30, %s786_s30 }
  0x29   :  { %p793_p4 = por %p792_p3, %p791_p2 }
  0x2b   :  { %p794_p5 = pnand %p793_p4, %p787_p1 }
  0x2d   :  { %797 = shalt.err (!%p794_p5)
}
  0x2e   :  { %55 = dma.hbm_to_vmem [thread:$0]  %s993_s3, 1024, %s50_s28, [#allocation6], %s847_s12, %s847_s12, %s848_s13  }
  0x2f   :  { %s806_s0 = scalar_lea.vmem %s78_s29, 1024  ;;  %p811_p7 = scmp.lt.s32.totalorder %s78_s29, %s78_s29 }
  0x30   :  { %p807_p6 = scmp.ne.s32.totalorder %s78_s29, %s806_s0  ;;  %p812_p8 = scmp.lt.s32.totalorder %s806_s0, %s806_s0 }
  0x32   :  { %p813_p9 = por %p812_p8, %p811_p7 }
  0x34   :  { %p814_p10 = pnand %p813_p9, %p807_p6 }
  0x36   :  { %817 = shalt.err (!%p814_p10)
}
  0x37   :  { %83 = dma.hbm_to_vmem [thread:$0]  %s997_s7, 1024, %s78_s29, [#allocation9], %s847_s12, %s847_s12, %s848_s13  }
  0x38   :  { %838 = dma.done.wait [#allocation3], 256  }
  0x39   :  { %839 = vsyncadd [#allocation3], 4294967040 }
  0x3a   :  { %840 = dma.done.wait [#allocation6], 1280  }
  0x3b   :  { %841 = vsyncadd [#allocation6], 4294966016 }
  0x3c   :  { %842 = dma.done.wait [#allocation9], 2048  }
  0x3d   :  { %843 = vsyncadd [#allocation9], 4294965248  ;;  %v855_v0 = vmov 0.0   ;;  %vm856_vm0 = vmmov 0   ;;  %v692_v1 = vld [vmem:[#allocation5 + $0x8] sm:$0xff]   ;;  %v693_v2 = vld [vmem:[#allocation5] sm:$0xff]  }
  0x3e   :  { %612 = vmatprep.subr.bf16.mxu0 %v855_v0  ;;  %616 = vmatprep.mubr.msk.bf16.mxu0 %vm856_vm0, %v855_v0  ;;  %v102_v3 = vld [vmem:[#allocation2] sm:$0xff]  ;;  %v103_v4 = vld [vmem:[#allocation2 + $0x8] sm:$0xff]  ;;  %v694_v5 = vld [vmem:[#allocation7 + $0x38] sm:$0xff]   ;;  %vm128_vm1 = vcmask 261120  }
  0x3f   :  { %620 = vmatprep.subr.bf16.mxu1 %v855_v0  ;;  %636 = vmatprep.mubr.msk.bf16.mxu1 %vm856_vm0, %v855_v0  ;;  %v104_v6 = vpack.c.bf16 %v103_v4, %v102_v3  ;;  %v695_v7 = vld [vmem:[#allocation7 + $0x30] sm:$0xff]   ;;  %v696_v8 = vld [vmem:[#allocation7 + $0x28] sm:$0xff]   ;;  %v697_v9 = vld [vmem:[#allocation7 + $0x20] sm:$0xff]  }
  0x40   :  { %613 = vmatpush3.bf16.msra.mxu0 %v692_v1  ;;  %621 = vmatpush3.bf16.msra.mxu1 %v694_v5  ;;  %v698_v10 = vld [vmem:[#allocation7 + $0x18] sm:$0xff]   ;;  %v699_v11 = vld [vmem:[#allocation7 + $0x10] sm:$0xff]   ;;  %v700_v12 = vld [vmem:[#allocation7 + $0x8] sm:$0xff]  }
  0x41   :  { %614 = vmatprep.subr.bf16.mxu0 %v855_v0  ;;  %622 = vmatprep.subr.bf16.mxu1 %v855_v0  ;;  %v701_v13 = vld [vmem:[#allocation7] sm:$0xff]   ;;  %v702_v14 = vld [vmem:[#allocation8 + $0x38] sm:$0xff]   ;;  %v703_v15 = vld [vmem:[#allocation8 + $0x30] sm:$0xff]  }
  0x42   :  { %v704_v16 = vld [vmem:[#allocation8 + $0x28] sm:$0xff]   ;;  %v705_v17 = vld [vmem:[#allocation8 + $0x20] sm:$0xff]   ;;  %v706_v18 = vld [vmem:[#allocation8 + $0x18] sm:$0xff]  }
  0x43   :  { %v551_v19 = vld [vmem:[%s992_s2] ss:$0 sm:$0xff]  ;;  %v707_v31 = vld [vmem:[#allocation8 + $0x10] sm:$0xff]   ;;  %v708_v32 = vld [vmem:[#allocation8 + $0x8] sm:$0xff]  }
  0x44   :  { %615 = vmatpush3.bf16.msra.mxu0 %v693_v2  ;;  %623 = vmatpush3.bf16.msra.mxu1 %v695_v7  ;;  %v709_v33 = vld [vmem:[#allocation8] sm:$0xff]   ;;  %v710_v34 = vld [vmem:[#allocation10 + $0x38] sm:$0xff]   ;;  %v711_v35 = vld [vmem:[#allocation10 + $0x30] sm:$0xff]  }
  0x45   :  { %640 = vmatprep.subr.bf16.mxu0 %v855_v0  ;;  %624 = vmatprep.subr.bf16.mxu1 %v855_v0  ;;  %v712_v36 = vld [vmem:[#allocation10 + $0x28] sm:$0xff]   ;;  %v713_v37 = vld [vmem:[#allocation10 + $0x20] sm:$0xff]   ;;  %v714_v38 = vld [vmem:[#allocation10 + $0x18] sm:$0xff]  }
  0x46   :  { %v555_v39 = vld [vmem:[%s994_s4] ss:$0 sm:$0xff]  ;;  %v715_v51 = vld [vmem:[#allocation10 + $0x10] sm:$0xff]   ;;  %v716_v52 = vld [vmem:[#allocation10 + $0x8] sm:$0xff]  }
  0x47   :  { %617 = vmatmul.mubr.msk.bf16.vlgmr.msra.gmra.mxu0 %vm128_vm1, %v104_v6  ;;  %v717_v53 = vld [vmem:[#allocation10] sm:$0xff]  }
  0x48   :  { %656 = vmatprep.mubr.msk.bf16.mxu0 %vm856_vm0, %v855_v0  ;;  %625 = vmatpush3.bf16.msra.mxu1 %v696_v8  ;;  %v564_v54 = vld [vmem:[%s996_s6] ss:$0 sm:$0xff]  ;;  %s857_s6 = smov [#allocation11]  }
  0x49   :  { %626 = vmatprep.subr.bf16.mxu1 %v855_v0  ;;  %641 = vmatpush3.bf16.msra.mxu0 %v702_v14  ;;  %s537_s18 = sshll.u32 %s857_s6, 4  ;;  %s538_s18 = int_to_ptr.vmem [resolvable:$true] %s537_s18 }
  0x4a   :  { %642 = vmatprep.subr.bf16.mxu0 %v855_v0  ;;  %s818_s19 = scalar_lea.vmem %s538_s18, 256  ;;  %p823_p12 = scmp.lt.s32.totalorder %s538_s18, %s538_s18 }
  0x4b   :  { %p819_p11 = scmp.ne.s32.totalorder %s538_s18, %s818_s19  ;;  %p824_p13 = scmp.lt.s32.totalorder %s818_s19, %s818_s19 }
  0x4c   :  { %627 = vmatpush3.bf16.msra.mxu1 %v697_v9 }
  0x4d   :  { %628 = vmatprep.subr.bf16.mxu1 %v855_v0  ;;  %643 = vmatpush3.bf16.msra.mxu0 %v703_v15  ;;  %p825_p0 = por %p824_p13, %p823_p12 }
  0x4e   :  { %644 = vmatprep.subr.bf16.mxu0 %v855_v0 }
  0x4f   :  { %p826_p1 = pnand %p825_p0, %p819_p11 }
  0x50   :  { %629 = vmatpush3.bf16.msra.mxu1 %v698_v10 }
  0x51   :  { %630 = vmatprep.subr.bf16.mxu1 %v855_v0  ;;  %645 = vmatpush3.bf16.msra.mxu0 %v704_v16 }
  0x52   :  { %646 = vmatprep.subr.bf16.mxu0 %v855_v0 }
  0x54   :  { %631 = vmatpush3.bf16.msra.mxu1 %v699_v11 }
  0x55   :  { %632 = vmatprep.subr.bf16.mxu1 %v855_v0  ;;  %647 = vmatpush3.bf16.msra.mxu0 %v705_v17 }
  0x56   :  { %648 = vmatprep.subr.bf16.mxu0 %v855_v0 }
  0x58   :  { %633 = vmatpush3.bf16.msra.mxu1 %v700_v12 }
  0x59   :  { %634 = vmatprep.subr.bf16.mxu1 %v855_v0  ;;  %649 = vmatpush3.bf16.msra.mxu0 %v706_v18 }
  0x5a   :  { %650 = vmatprep.subr.bf16.mxu0 %v855_v0 }
  0x5c   :  { %635 = vmatpush3.bf16.msra.mxu1 %v701_v13 }
  0x5d   :  { %660 = vmatprep.subr.bf16.mxu1 %v855_v0  ;;  %651 = vmatpush3.bf16.msra.mxu0 %v707_v31 }
  0x5e   :  { %652 = vmatprep.subr.bf16.mxu0 %v855_v0 }
  0x61   :  { %653 = vmatpush3.bf16.msra.mxu0 %v708_v32 }
  0x62   :  { %654 = vmatprep.subr.bf16.mxu0 %v855_v0 }
  0x65   :  { %655 = vmatpush3.bf16.msra.mxu0 %v709_v33 }
 0x107   :  { %v166_v20 = vpop.f32.mrf.mxu0 }
 0x108   :  { %v167_v21 = vadd.f32 %v551_v19, %v166_v20 }
 0x109   :  { %v618_v22 = vpop.f32.mrf.mxu0 }
 0x10a   :  { %v175_v24 = vmul.f32 0.01, %v167_v21  ;;  %vm173_vm2 = vcmp.gt.f32.partialorder %v167_v21, 0.0 }
 0x10b   :  { %v169_v23 = vpop.f32.mrf.mxu0 }
 0x10c   :  { %v170_v25 = vadd.f32 %v551_v19, %v169_v23  ;;  %v177_v28 = vsel %vm173_vm2, %v167_v21, %v175_v24 }
 0x10d   :  { %v619_v26 = vpop.f32.mrf.mxu0 }
 0x10e   :  { %vm174_vm3 = vcmp.gt.f32.partialorder %v170_v25, 0.0  ;;  %v176_v27 = vmul.f32 0.01, %v170_v25 }
 0x110   :  { %v178_v29 = vsel %vm174_vm3, %v170_v25, %v176_v27 }
 0x111   :  { %v179_v30 = vpack.c.bf16 %v178_v29, %v177_v28 }
 0x113   :  { %637 = vmatmul.mubr.bf16.vlgmr.msra.gmra.mxu1 %v179_v30 }
 0x114   :  { %676 = vmatprep.mubr.msk.bf16.mxu1 %vm856_vm0, %v855_v0  ;;  %661 = vmatpush3.bf16.msra.mxu1 %v710_v34 }
 0x115   :  { %662 = vmatprep.subr.bf16.mxu1 %v855_v0 }
 0x118   :  { %663 = vmatpush3.bf16.msra.mxu1 %v711_v35 }
 0x119   :  { %664 = vmatprep.subr.bf16.mxu1 %v855_v0 }
 0x11c   :  { %665 = vmatpush3.bf16.msra.mxu1 %v712_v36 }
 0x11d   :  { %666 = vmatprep.subr.bf16.mxu1 %v855_v0 }
 0x120   :  { %667 = vmatpush3.bf16.msra.mxu1 %v713_v37 }
 0x121   :  { %668 = vmatprep.subr.bf16.mxu1 %v855_v0 }
 0x124   :  { %669 = vmatpush3.bf16.msra.mxu1 %v714_v38 }
 0x125   :  { %670 = vmatprep.subr.bf16.mxu1 %v855_v0 }
 0x128   :  { %671 = vmatpush3.bf16.msra.mxu1 %v715_v51 }
 0x129   :  { %672 = vmatprep.subr.bf16.mxu1 %v855_v0 }
 0x12c   :  { %673 = vmatpush3.bf16.msra.mxu1 %v716_v52 }
 0x12d   :  { %674 = vmatprep.subr.bf16.mxu1 %v855_v0  ;;  %v573_v0 = vld [vmem:[%s998_s8] ss:$0 sm:$0xff] }
 0x130   :  { %675 = vmatpush3.bf16.msra.mxu1 %v717_v53 }
 0x1d3   :  { %v285_v40 = vpop.f32.mrf.mxu1 }
 0x1d4   :  { %v286_v41 = vadd.f32 %v555_v39, %v285_v40 }
 0x1d5   :  { %v638_v42 = vpop.f32.mrf.mxu1 }
 0x1d6   :  { %v294_v44 = vmul.f32 0.01, %v286_v41  ;;  %vm292_vm4 = vcmp.gt.f32.partialorder %v286_v41, 0.0 }
 0x1d7   :  { %v288_v43 = vpop.f32.mrf.mxu1 }
 0x1d8   :  { %v289_v45 = vadd.f32 %v555_v39, %v288_v43  ;;  %v296_v48 = vsel %vm292_vm4, %v286_v41, %v294_v44 }
 0x1d9   :  { %v639_v46 = vpop.f32.mrf.mxu1 }
 0x1da   :  { %vm293_vm5 = vcmp.gt.f32.partialorder %v289_v45, 0.0  ;;  %v295_v47 = vmul.f32 0.01, %v289_v45 }
 0x1dc   :  { %v297_v49 = vsel %vm293_vm5, %v289_v45, %v295_v47 }
 0x1dd   :  { %v298_v50 = vpack.c.bf16 %v297_v49, %v296_v48 }
 0x1df   :  { %657 = vmatmul.mubr.bf16.vlgmr.msra.gmra.mxu0 %v298_v50 }
 0x29f   :  { %v404_v55 = vpop.f32.mrf.mxu0 }
 0x2a0   :  { %v405_v56 = vadd.f32 %v564_v54, %v404_v55 }
 0x2a1   :  { %v658_v57 = vpop.f32.mrf.mxu0 }
 0x2a2   :  { %v413_v59 = vmul.f32 0.01, %v405_v56  ;;  %vm411_vm6 = vcmp.gt.f32.partialorder %v405_v56, 0.0 }
 0x2a3   :  { %v407_v58 = vpop.f32.mrf.mxu0 }
 0x2a4   :  { %v408_v60 = vadd.f32 %v564_v54, %v407_v58  ;;  %v415_v63 = vsel %vm411_vm6, %v405_v56, %v413_v59 }
 0x2a5   :  { %v659_v61 = vpop.f32.mrf.mxu0 }
 0x2a6   :  { %vm412_vm7 = vcmp.gt.f32.partialorder %v408_v60, 0.0  ;;  %v414_v62 = vmul.f32 0.01, %v408_v60 }
 0x2a8   :  { %v416_v1 = vsel %vm412_vm7, %v408_v60, %v414_v62 }
 0x2a9   :  { %v417_v2 = vpack.c.bf16 %v416_v1, %v415_v63 }
 0x2ab   :  { %677 = vmatmul.mubr.bf16.vlgmr.msra.gmra.mxu1 %v417_v2 }
 0x36b   :  { %v523_v3 = vpop.f32.mrf.mxu1 }
 0x36c   :  { %v524_v4 = vadd.f32 %v573_v0, %v523_v3 }
 0x36d   :  { %v678_v5 = vpop.f32.mrf.mxu1 }
 0x36e   :  { %530 = vst [vmem:[#allocation11] sm:$0xff] %v524_v4 }
 0x36f   :  { %v526_v6 = vpop.f32.mrf.mxu1 }
 0x370   :  { %v527_v7 = vadd.f32 %v573_v0, %v526_v6 }
 0x371   :  { %v679_v8 = vpop.f32.mrf.mxu1 }
 0x372   :  { %531 = vst [vmem:[#allocation11 + $0x8] sm:$0xff] %v527_v7 }
 0x373   :  { %829 = shalt.err (!%p826_p1)
}
 0x374   :  { %543 = dma.vmem_to_hbm [thread:$0]  %s538_s18, 256, %s999_s9, [#allocation4], %s851_s23, %s851_s23, %s852_s24  }
 0x375   :  { %844 = dma.done.wait [#allocation4], 256  }
 0x376   :  { %845 = vsyncadd [#allocation4], 4294967040 }
 0x377   :  { %547 = vsyncpa [#allocation3], 1 }
 0x378   :  { %548 = vsyncpa [#allocation6], 1 }
 0x379   :  { %549 = vsyncpa [#allocation9], 1 }
 0x37a   :  { %550 = vsyncpa [#allocation4], 1 }

</bundles_post_ra>
